<compile_context>
chip_gen: v5e
topology: v5e:2x2
jax: 0.10.0
libtpu: 0.0.40
codegen_flags: <defaults>
</compile_context>

<pallas_src>
import jax
import jax.numpy as jnp
from jax.experimental import pallas as pl
from jax.experimental.pallas import tpu as pltpu


def _add_one_kernel(x_ref, o_ref):
    # Pure VPU elementwise add on the whole VMEM tile; weak-typed literal
    # preserves the input dtype.
    o_ref[...] = x_ref[...] + 1


def _sublane_granularity(dtype) -> int:
    # Packed-sublane row granularity: 8 for 32-bit, 16 for 16-bit, 32 for 8-bit.
    itemsize = jnp.dtype(dtype).itemsize
    return {4: 8, 2: 16, 1: 32}.get(itemsize, 8)


def _add_one_2d(x2d: jax.Array) -> jax.Array:
    """Run the kernel on a lane-dense (rows, L) 2D view (L a multiple of 128)."""
    rows, L = x2d.shape
    dtype = x2d.dtype
    itemsize = jnp.dtype(dtype).itemsize
    sub = _sublane_granularity(dtype)

    # Target ~4 MiB blocks: big enough to sit near the HBM roofline, small
    # enough that 2 double-buffered copies of (input + output) stay inside
    # v7x's 32 MiB scoped-VMEM default (64 MiB physical per TC).
    target_block_bytes = 4 * 1024 * 1024
    tile_rows = max(sub, (target_block_bytes // (L * itemsize)) // sub * sub)

    if rows <= tile_rows:
        if rows >= 2 * sub and rows * L * itemsize >= (1 << 20):
            # Big enough to be worth splitting across both v7x TensorCores.
            tile_rows = pl.cdiv(pl.cdiv(rows, 2), sub) * sub
        else:
            # Tiny input: single block equal to the full array (always legal).
            tile_rows = rows

    grid = (pl.cdiv(rows, tile_rows),)  # partial last block handled by Pallas

    return pl.pallas_call(
        _add_one_kernel,
        out_shape=jax.ShapeDtypeStruct((rows, L), dtype),
        grid_spec=pltpu.PrefetchScalarGridSpec(
            num_scalar_prefetch=0,
            grid=grid,
            in_specs=[pl.BlockSpec((tile_rows, L), lambda i: (i, 0))],
            out_specs=pl.BlockSpec((tile_rows, L), lambda i: (i, 0)),
        ),
        compiler_params=pltpu.CompilerParams(
            dimension_semantics=("parallel",),
        ),
    )(x2d)


def add_one(x: jax.Array) -> jax.Array:
    """output = input + 1, computed in a Pallas TPU kernel (layout-agnostic)."""
    orig_shape = x.shape
    n = x.size
    if n == 0:
        return x

    sub = _sublane_granularity(x.dtype)

    # Pick the widest lane-dense L (multiple of 128) that divides n, preferring
    # one that leaves at least a full sublane group of rows.  The reshape to
    # (n // L, L) of a contiguous array is metadata-only: no extra HBM pass.
    candidates = (4096, 2048, 1024, 512, 256, 128)
    L = None
    for cand in candidates:
        if n % cand == 0 and (n // cand) >= sub:
            L = cand
            break
    if L is None:
        for cand in candidates:
            if n % cand == 0:
                L = cand
                break

    if L is not None:
        out2d = _add_one_2d(x.reshape(n // L, L))
        return out2d.reshape(orig_shape)

    # Fallback (n not a multiple of 128): pad once to a lane-aligned slab.
    # TODO(synk): this fallback costs one extra pad/slice HBM pass; it is only
    # taken when the element count is not a multiple of 128.
    lanes = 128
    rows = pl.cdiv(n, lanes)
    rows_p = pl.cdiv(rows, sub) * sub
    padded = rows_p * lanes
    x_flat = jnp.pad(jnp.ravel(x), (0, padded - n))
    out2d = _add_one_2d(x_flat.reshape(rows_p, lanes))
    return out2d.reshape(-1)[:n].reshape(orig_shape)


if __name__ == "__main__":
    key = jax.random.PRNGKey(0)
    # Forward takes an arbitrary tensor; use NCHW (2, 4, 16, 16).
    x = jax.random.normal(key, (2, 4, 16, 16), dtype=jnp.float32)

    out = add_one(x)
    jax.block_until_ready(out)

    expected = x + 1
    assert out.shape == x.shape and out.dtype == x.dtype
    assert jnp.allclose(out, expected, atol=0, rtol=0)

    print("KERNEL_OK")
</pallas_src>

<mosaic_0001>
module attributes {stable_mosaic.version = 11 : i64} {
  func.func @_add_one_kernel(%arg0: i32, %arg1: memref<8x256xf32, #tpu.memory_space<vmem>>, %arg2: memref<8x256xf32, #tpu.memory_space<vmem>>) attributes {dimension_semantics = [#tpu.dimension_semantics<parallel>], iteration_bounds = array<i64: 1>, scalar_prefetch = 0 : i64, scratch_operands = 0 : i64, tpu.core_type = #tpu.core_type<tc>, window_params = [{transform_indices = @transform_0, window_bounds = array<i64: 8, 256>}, {transform_indices = @transform_1, window_bounds = array<i64: 8, 256>}]} {
    %c0 = arith.constant 0 : index
    %c0_0 = arith.constant 0 : index
    %0 = vector.load %arg1[%c0, %c0_0] : memref<8x256xf32, #tpu.memory_space<vmem>>, vector<8x256xf32>
    %cst = arith.constant 1.000000e+00 : f32
    %1 = vector.broadcast %cst : f32 to vector<8x256xf32>
    %2 = arith.addf %0, %1 : vector<8x256xf32>
    %c0_1 = arith.constant 0 : index
    %c0_2 = arith.constant 0 : index
    %3 = vector.load %arg2[%c0_1, %c0_2] : memref<8x256xf32, #tpu.memory_space<vmem>>, vector<8x256xf32>
    tpu.vector_store %arg2[%c0_1, %c0_2], %2 {strides = array<i32>} : memref<8x256xf32, #tpu.memory_space<vmem>>, vector<8x256xf32>,
    return
  }
  func.func @transform_0(%arg0: i32) -> (i32, i32) {
    %c0_i32 = arith.constant 0 : i32
    %c0_i32_0 = arith.constant 0 : i32
    return %arg0, %c0_i32 : i32, i32
  }
  func.func @transform_1(%arg0: i32) -> (i32, i32) {
    %c0_i32 = arith.constant 0 : i32
    %c0_i32_0 = arith.constant 0 : i32
    return %arg0, %c0_i32 : i32, i32
  }
}

</mosaic_0001>

<bundles_post_ra>
// kernel: tpu_custom_call.1
= control target key start
LH: loop header
LB: loop body
LE: loop exit
PB: predicated region body
PF: predicated region fallthrough
CT: control target
= control target key end

     0   :  { %6 = vsyncpa [#allocation3], 0  ;;  %s118_s0 = inlined_call_operand.hbm [shape: f32[8,256], index: 0, kind: input, shape index: {}]   ;;  %s119_s1 = inlined_call_operand.hbm [shape: f32[8,256], index: 1, kind: output, shape index: {}]  }
   0x1   :  { %7 = vsyncpa [#allocation4], 0  ;;  %s13_s8 = sshll.u32 %s118_s0, 4  ;;  %s100_s9 = smov [#allocation2]   ;;  %s14_s8 = int_to_ptr.hbm [resolvable:$true] %s13_s8 }
   0x2   :  { %s15_s10 = sshll.u32 %s100_s9, 4  ;;  %s16_s10 = int_to_ptr.vmem [resolvable:$true] %s15_s10 }
   0x3   :  { %18 = dma.hbm_to_vmem [thread:$0]  %s14_s8, 256, %s16_s10, [#allocation3]  }
   0x4   :  { %96 = dma.done.wait [#allocation3], 256  }
   0x5   :  { %97 = vsyncadd [#allocation3], 4294967040  ;;  %s101_s11 = smov [#allocation5]   ;;  %s36_s15 = sshll.u32 %s119_s1, 4  ;;  %v23_v0 = vld [vmem:[#allocation2] sm:$0xff]  ;;  %v24_v1 = vld [vmem:[#allocation2 + $0x8] sm:$0xff]  ;;  %s37_s15 = int_to_ptr.hbm [resolvable:$true] %s36_s15 }
   0x6   :  { %s34_s12 = sshll.u32 %s101_s11, 4  ;;  %v25_v2 = vadd.f32 1.0, %v23_v0  ;;  %v26_v3 = vadd.f32 1.0, %v24_v1  ;;  %s35_s12 = int_to_ptr.vmem [resolvable:$true] %s34_s12 }
   0x8   :  { %27 = vst [vmem:[#allocation5] sm:$0xff] %v25_v2 }
   0x9   :  { %28 = vst [vmem:[#allocation5 + $0x8] sm:$0xff] %v26_v3 }
   0xa   :  { %39 = dma.vmem_to_hbm [thread:$0]  %s35_s12, 256, %s37_s15, [#allocation4]  }
   0xb   :  { %98 = dma.done.wait [#allocation4], 256  }
   0xc   :  { %99 = vsyncadd [#allocation4], 4294967040 }
   0xd   :  { %44 = vsyncpa [#allocation3], 1 }
   0xe   :  { %45 = vsyncpa [#allocation4], 1 }

</bundles_post_ra>
